<compile_context>
chip_gen: v5e
topology: v5e:2x2
jax: 0.10.0
libtpu: 0.0.40
codegen_flags: <defaults>
</compile_context>

<pallas_src>
import jax
import jax.numpy as jnp
from jax.experimental import pallas as pl
from jax.experimental.pallas import tpu as pltpu

input_size = 10
hidden_size = 20
output_size = 1

TILE_B_MAX = 16384  # batch rows (lanes) per grid step; multiple of 128


def _round_up(n, m):
    return ((n + m - 1) // m) * m


def _choose_tile_b(b_lane):
    """Pick a lane-granular batch tile: big enough to amortize step overhead,
    >= 2 grid blocks when possible (v7x megacore), minimal padding waste."""
    if b_lane <= 128:
        return 128
    n_steps = max(2, pl.cdiv(b_lane, TILE_B_MAX))
    return min(TILE_B_MAX, _round_up(pl.cdiv(b_lane, n_steps), 128))


def simplenet_kernel(x_ref, w1_ref, b1_ref, w2_ref, b2_ref, o_ref):
    # x: [in, T] (batch on lanes), w1: [hid, in], b1: [hid, 1],
    # w2: [hid, 1] (column), b2: (1,) SMEM scalar, o: [1, T].
    h = jnp.dot(w1_ref[...], x_ref[...],
                preferred_element_type=jnp.float32)          # [hid, T]  MXU
    h = jnp.maximum(h + b1_ref[...], 0.0)                    # bias + ReLU, VPU
    # fc2 (out_features == 1): multiply + sublane reduce (VPU/XLU) instead of
    # a second M=1 MXU pass.
    o = jnp.sum(h * w2_ref[...], axis=0, keepdims=True) + b2_ref[0]  # [1, T]
    o_ref[...] = o.astype(o_ref.dtype)


def prepare_params(w1, b1, w2, b2):
    """One-time layout glue (PyTorch [out,in] weights -> kernel layout)."""
    w1_k = jnp.asarray(w1)                                  # [hid, in] (as-is)
    b1_c = jnp.asarray(b1).reshape(hidden_size, 1)          # [hid, 1]
    w2_c = jnp.asarray(w2).reshape(hidden_size, 1)          # [hid, 1] column
    b2_s = jnp.asarray(b2).reshape(output_size)             # (1,) -> SMEM
    return w1_k, b1_c, w2_c, b2_s


def simplenet_forward(x, params):
    """x: [B, input_size] f32; params from prepare_params()."""
    w1_k, b1_c, w2_c, b2_s = params
    B = x.shape[0]

    b_lane = _round_up(B, 128)
    tile_b = _choose_tile_b(b_lane)
    grid_n = pl.cdiv(b_lane, tile_b)
    B_pad = grid_n * tile_b

    if B_pad != B:
        x = jnp.pad(x, ((0, B_pad - B), (0, 0)))
    # One-time wrapper-side transpose: batch onto the lane axis.
    x_t = x.T                                               # [in, B_pad]

    flops = 2 * B_pad * (input_size * hidden_size + hidden_size * output_size)
    bytes_accessed = 4 * (B_pad * input_size + B_pad * output_size
                          + input_size * hidden_size + 2 * hidden_size
                          + output_size)

    out = pl.pallas_call(
        simplenet_kernel,
        out_shape=jax.ShapeDtypeStruct((1, B_pad), x.dtype),
        grid=(grid_n,),
        in_specs=[
            # x: streamed, one lane-tile of batch per grid step.
            pl.BlockSpec((input_size, tile_b), lambda i: (0, i)),
            # Weights / biases: constant index_map -> DMA'd once, VMEM-resident.
            pl.BlockSpec((hidden_size, input_size), lambda i: (0, 0)),
            pl.BlockSpec((hidden_size, 1), lambda i: (0, 0)),
            pl.BlockSpec((hidden_size, 1), lambda i: (0, 0)),
            # b2 is a true scalar -> SMEM.
            pl.BlockSpec(memory_space=pltpu.MemorySpace.SMEM),
        ],
        # Lane-dense output block: [1, tile_b] -> unmasked vector stores.
        out_specs=pl.BlockSpec((1, tile_b), lambda i: (0, i)),
        compiler_params=pltpu.CompilerParams(
            dimension_semantics=("parallel",)),
        cost_estimate=pl.CostEstimate(
            flops=flops, transcendentals=0, bytes_accessed=bytes_accessed),
    )(x_t, w1_k, b1_c, w2_c, b2_s)

    # (1, B_pad) -> (B_pad, 1) is a free, order-preserving reshape.
    out = out.reshape(B_pad, output_size)
    if B_pad != B:
        out = out[:B]
    return out


def init_params(key):
    """Deterministic, PyTorch-nn.Linear-style uniform init."""
    k1, k2, k3, k4 = jax.random.split(key, 4)
    bound1 = 1.0 / jnp.sqrt(input_size)
    bound2 = 1.0 / jnp.sqrt(hidden_size)
    w1 = jax.random.uniform(k1, (hidden_size, input_size), jnp.float32,
                            -bound1, bound1)
    b1 = jax.random.uniform(k2, (hidden_size,), jnp.float32, -bound1, bound1)
    w2 = jax.random.uniform(k3, (output_size, hidden_size), jnp.float32,
                            -bound2, bound2)
    b2 = jax.random.uniform(k4, (output_size,), jnp.float32, -bound2, bound2)
    return w1, b1, w2, b2


def _reference(x, w1, b1, w2, b2):
    return jnp.maximum(x @ w1.T + b1, 0.0) @ w2.T + b2


if __name__ == "__main__":
    key = jax.random.PRNGKey(0)
    kx, kp = jax.random.split(key)
    w1, b1, w2, b2 = init_params(kp)
    params = prepare_params(w1, b1, w2, b2)

    # Small demo batch (single 128-lane tile, padded).
    batch = 8
    x = jax.random.normal(kx, (batch, input_size), jnp.float32)
    out = jax.block_until_ready(simplenet_forward(x, params))
    ref = _reference(x, w1, b1, w2, b2)
    assert out.shape == (batch, output_size)
    assert jnp.allclose(out, ref, atol=1e-5, rtol=1e-5)

    # Non-multiple batch: exercises the 2-block grid + lane padding path.
    batch_big = 300
    x_big = jax.random.normal(jax.random.PRNGKey(1), (batch_big, input_size),
                              jnp.float32)
    out_big = jax.block_until_ready(simplenet_forward(x_big, params))
    ref_big = _reference(x_big, w1, b1, w2, b2)
    assert out_big.shape == (batch_big, output_size)
    assert jnp.allclose(out_big, ref_big, atol=1e-5, rtol=1e-5)

    print("KERNEL_OK")
</pallas_src>

<mosaic_0001>
module attributes {stable_mosaic.version = 11 : i64} {
  func.func @simplenet_kernel(%arg0: i32, %arg1: memref<10x128xf32, #tpu.memory_space<vmem>>, %arg2: memref<20x10xf32, #tpu.memory_space<vmem>>, %arg3: memref<20x1xf32, #tpu.memory_space<vmem>>, %arg4: memref<20x1xf32, #tpu.memory_space<vmem>>, %arg5: memref<1xf32, #tpu.memory_space<smem>>, %arg6: memref<1x128xf32, #tpu.memory_space<vmem>>) attributes {dimension_semantics = [#tpu.dimension_semantics<parallel>], iteration_bounds = array<i64: 1>, scalar_prefetch = 0 : i64, scratch_operands = 0 : i64, tpu.core_type = #tpu.core_type<tc>, window_params = [{transform_indices = @transform_0, window_bounds = array<i64: 10, 128>}, {pipeline_mode = #tpu.pipeline_mode<synchronous>, transform_indices = @transform_1, window_bounds = array<i64: 20, 10>}, {pipeline_mode = #tpu.pipeline_mode<synchronous>, transform_indices = @transform_2, window_bounds = array<i64: 20, 1>}, {pipeline_mode = #tpu.pipeline_mode<synchronous>, transform_indices = @transform_3, window_bounds = array<i64: 20, 1>}, {transform_indices = @transform_4, window_bounds = array<i64: 1>}, {transform_indices = @transform_5, window_bounds = array<i64: 1, 128>}]} {
    %c0 = arith.constant 0 : index
    %c0_0 = arith.constant 0 : index
    %0 = vector.load %arg2[%c0, %c0_0] : memref<20x10xf32, #tpu.memory_space<vmem>>, vector<20x10xf32>
    %c0_1 = arith.constant 0 : index
    %c0_2 = arith.constant 0 : index
    %1 = vector.load %arg1[%c0_1, %c0_2] : memref<10x128xf32, #tpu.memory_space<vmem>>, vector<10x128xf32>
    %cst = arith.constant dense<0.000000e+00> : vector<20x128xf32>
    %2 = tpu.matmul %0, %1, %cst {dimension_numbers = #tpu.dot_dimension_numbers<[1], [0], [0], [1], [0, 0, 1, 1], [], []>} : vector<20x10xf32>, vector<10x128xf32>, vector<20x128xf32> -> vector<20x128xf32>
    %c0_3 = arith.constant 0 : index
    %c0_4 = arith.constant 0 : index
    %3 = vector.load %arg3[%c0_3, %c0_4] : memref<20x1xf32, #tpu.memory_space<vmem>>, vector<20x1xf32>
    %4 = vector.broadcast %3 : vector<20x1xf32> to vector<20x128xf32>
    %5 = arith.addf %2, %4 : vector<20x128xf32>
    %cst_5 = arith.constant 0.000000e+00 : f32
    %6 = vector.broadcast %cst_5 : f32 to vector<20x128xf32>
    %7 = arith.maximumf %5, %6 : vector<20x128xf32>
    %c0_6 = arith.constant 0 : index
    %c0_7 = arith.constant 0 : index
    %8 = vector.load %arg4[%c0_6, %c0_7] : memref<20x1xf32, #tpu.memory_space<vmem>>, vector<20x1xf32>
    %9 = vector.broadcast %8 : vector<20x1xf32> to vector<20x128xf32>
    %10 = arith.mulf %7, %9 : vector<20x128xf32>
    %cst_8 = arith.constant dense<0.000000e+00> : vector<128xf32>
    %11 = vector.multi_reduction <add>, %10, %cst_8 [0] : vector<20x128xf32> to vector<128xf32>
    %12 = vector.shape_cast %11 : vector<128xf32> to vector<1x128xf32>
    %c0_9 = arith.constant 0 : index
    %13 = memref.load %arg5[%c0_9] : memref<1xf32, #tpu.memory_space<smem>>
    %14 = vector.broadcast %13 : f32 to vector<1x128xf32>
    %15 = arith.addf %12, %14 : vector<1x128xf32>
    %c0_10 = arith.constant 0 : index
    %c0_11 = arith.constant 0 : index
    %16 = vector.load %arg6[%c0_10, %c0_11] : memref<1x128xf32, #tpu.memory_space<vmem>>, vector<1x128xf32>
    tpu.vector_store %arg6[%c0_10, %c0_11], %15 {strides = array<i32>} : memref<1x128xf32, #tpu.memory_space<vmem>>, vector<1x128xf32>,
    return
  }
  func.func @transform_0(%arg0: i32) -> (i32, i32) {
    %c0_i32 = arith.constant 0 : i32
    %c0_i32_0 = arith.constant 0 : i32
    return %c0_i32, %arg0 : i32, i32
  }
  func.func @transform_1(%arg0: i32) -> (i32, i32) {
    %c0_i32 = arith.constant 0 : i32
    %c0_i32_0 = arith.constant 0 : i32
    %c0_i32_1 = arith.constant 0 : i32
    return %c0_i32, %c0_i32_0 : i32, i32
  }
  func.func @transform_2(%arg0: i32) -> (i32, i32) {
    %c0_i32 = arith.constant 0 : i32
    %c0_i32_0 = arith.constant 0 : i32
    %c0_i32_1 = arith.constant 0 : i32
    return %c0_i32, %c0_i32_0 : i32, i32
  }
  func.func @transform_3(%arg0: i32) -> (i32, i32) {
    %c0_i32 = arith.constant 0 : i32
    %c0_i32_0 = arith.constant 0 : i32
    %c0_i32_1 = arith.constant 0 : i32
    return %c0_i32, %c0_i32_0 : i32, i32
  }
  func.func @transform_4(%arg0: i32) -> i32 {
    %c0_i32 = arith.constant 0 : i32
    %c0_i32_0 = arith.constant 0 : i32
    return %c0_i32 : i32
  }
  func.func @transform_5(%arg0: i32) -> (i32, i32) {
    %c0_i32 = arith.constant 0 : i32
    %c0_i32_0 = arith.constant 0 : i32
    return %c0_i32, %arg0 : i32, i32
  }
}

</mosaic_0001>

<bundles_post_ra>
// kernel: tpu_custom_call.1
= control target key start
LH: loop header
LB: loop body
LE: loop exit
PB: predicated region body
PF: predicated region fallthrough
CT: control target
= control target key end

     0   :  { %vm55_vm0 = vcmask 1041408   ;;  %v178_v3 = vmov 0   ;;  %vm45_vm1 = vcmask 80896   ;;  %s249_s0 = inlined_call_operand.vmem [shape: f32[10,128], index: 0, kind: input, shape index: {}]   ;;  %s250_s1 = inlined_call_operand.vmem [shape: f32[20,10], index: 1, kind: input, shape index: {}]   ;;  %s251_s2 = inlined_call_operand.vmem [shape: f32[20,1], index: 2, kind: input, shape index: {}]   ;;  %s252_s3 = inlined_call_operand.vmem [shape: f32[20,1], index: 3, kind: input, shape index: {}]   ;;  %s253_s4 = inlined_call_operand.<no memory space> [shape: f32[1], index: 4, kind: input, shape index: {}]   ;;  %s254_s5 = inlined_call_operand.hbm [shape: f32[1,128], index: 5, kind: output, shape index: {}]  }
   0x1   :  { %v26_v0 = vld [vmem:[%s249_s0 + $0x8] sm:$0x3]  ;;  %v25_v1 = vld [vmem:[%s249_s0] sm:$0xff]  ;;  %149 = vset.pattern.permute.xlu0 %v178_v3  ;;  %v24_v6 = vld [vmem:[%s250_s1 + $0x10] sm:$0xf] }
   0x2   :  { %139 = vmatpush.msk.msra.mxu0 %vm55_vm0, %v26_v0  ;;  %143 = vmatpush.msk.msra.mxu1 %vm55_vm0, %v26_v0  ;;  %v27_v2 = vld [vmem:[%s251_s2] sm:$0xff]  ;;  %v23_v5 = vld [vmem:[%s250_s1 + $0x8] sm:$0xff] }
   0x3   :  { %144 = vmatpush.msk.msra.mxu2 %vm55_vm0, %v26_v0  ;;  %v22_v4 = vld [vmem:[%s250_s1] sm:$0xff] }
   0x4   :  { %74 = vmatpush.msra.mxu0 %v25_v1  ;;  %145 = vmatpush.msra.mxu1 %v25_v1 }
   0x5   :  { %11 = vsyncpa [#allocation4], 0  ;;  %146 = vmatpush.msra.mxu2 %v25_v1  ;;  %32 = vperm.xlu0 %149, %v27_v2   ;;  %v29_v7 = vld [vmem:[%s251_s2 + $0x10] sm:$0xf]  ;;  %v89_v8 = vld [vmem:[%s252_s3 + $0x8] sm:$0xff]  ;;  %vm110_vm2 = vcmask 1043456   ;;  %v120_v38 = vstv %s253_s4 }
   0x6   :  { %140 = vmatmul.msk.f32.vlgmr.msra.gmra.mxu0 %vm45_vm1, %v22_v4  ;;  %141 = vmatmul.msk.f32.vlgmr.msra.gmra.mxu1 %vm45_vm1, %v23_v5  ;;  %v28_v9 = vld [vmem:[%s251_s2 + $0x8] sm:$0xff]  ;;  %v88_v10 = vld [vmem:[%s252_s3] sm:$0xff]  ;;  %v90_v11 = vld [vmem:[%s252_s3 + $0x10] sm:$0xf]  ;;  %s179_s13 = smov [#allocation3]   ;;  %s130_s17 = sshll.u32 %s254_s5, 4  ;;  %s131_s17 = int_to_ptr.hbm [resolvable:$true] %s130_s17 }
   0x7   :  { %142 = vmatmul.msk.f32.vlgmr.msra.gmra.mxu2 %vm45_vm1, %v24_v6  ;;  %150 = vset.pattern.permute.xlu1 %v178_v3  ;;  %s128_s14 = sshll.u32 %s179_s13, 4  ;;  %s129_s14 = int_to_ptr.vmem [resolvable:$true] %s128_s14 }
   0x8   :  { %42 = vperm.xlu1 %150, %v29_v7   ;;  %151 = vset.pattern.permute.xlu2 %v178_v3 }
   0x9   :  { %98 = vperm.xlu2 %151, %v89_v8  }
   0xd   :  { %37 = vperm.xlu0 %149, %v28_v9  }
  0x10   :  { %93 = vperm.xlu1 %150, %v88_v10  }
  0x11   :  { %103 = vperm.xlu2 %151, %v90_v11  }
  0x63   :  { %v99_v17 = vpop.permute.xlu2 %98 }
  0x6b   :  { %v104_v28 = vpop.permute.xlu2 %103 }
  0x77   :  { %v33_v12 = vpop.permute.xlu0 %32 }
  0x7a   :  { %v43_v13 = vpop.permute.xlu1 %42 }
  0x7f   :  { %v38_v14 = vpop.permute.xlu0 %37 }
  0x82   :  { %v94_v23 = vpop.permute.xlu1 %93 }
  0x83   :  { %v76_v15 = vpop.f32.mrf.mxu0  ;;  %v79_v16 = vpop.f32.mrf.mxu1 }
  0x84   :  { %v77_v18 = vadd.f32 %v76_v15, %v33_v12  ;;  %v80_v19 = vadd.f32 %v79_v16, %v38_v14 }
  0x86   :  { %v85_v20 = vmax.f32 %v77_v18, 0.0  ;;  %v86_v21 = vmax.f32 %v80_v19, 0.0 }
  0x88   :  { %v107_v25 = vmul.f32 %v99_v17, %v86_v21  ;;  %v106_v26 = vmul.f32 %v94_v23, %v85_v20 }
  0x8a   :  { %v82_v22 = vpop.f32.mrf.mxu2  ;;  %v109_v30 = vadd.f32 %v107_v25, %v106_v26 }
  0x8b   :  { %v83_v24 = vadd.f32 %v82_v22, %v43_v13 }
  0x8d   :  { %v87_v27 = vmax.f32 %v83_v24, 0.0 }
  0x8f   :  { %v108_v29 = vmul.f32 %v104_v28, %v87_v27 }
  0x91   :  { %v111_v31 = vsel %vm110_vm2, %v108_v29, 0.0 }
  0x92   :  { %v112_v32 = vadd.f32 %v111_v31, %v109_v30 }
  0x94   :  { %v113_v33 = vrot.slane %v112_v32, 4 }
  0x96   :  { %v114_v34 = vadd.f32 %v113_v33, %v112_v32 }
  0x98   :  { %v115_v35 = vrot.slane %v114_v34, 2 }
  0x9a   :  { %v116_v36 = vadd.f32 %v115_v35, %v114_v34 }
  0x9c   :  { %v117_v37 = vrot.slane %v116_v36, 1 }
  0x9e   :  { %v118_v39 = vadd.f32 %v117_v37, %v116_v36 }
  0xa0   :  { %v121_v40 = vadd.f32 %v120_v38, %v118_v39 }
  0xa2   :  { %122 = vst [vmem:[#allocation3] sm:$0x1] %v121_v40 }
  0xa3   :  { %133 = dma.vmem_to_hbm [thread:$0]  %s129_s14, 16, %s131_s17, [#allocation4]  }
  0xa4   :  { %176 = dma.done.wait [#allocation4], 16  }
  0xa5   :  { %177 = vsyncadd [#allocation4], 4294967280 }
  0xa6   :  { %138 = vsyncpa [#allocation4], 1 }

</bundles_post_ra>
